<compile_context>
chip_gen: v6e
topology: v6e:2x2x1
jax: 0.10.0
libtpu: 0.0.40
codegen_flags: <defaults>
</compile_context>

<pallas_src>
import math
from functools import partial

import jax
import jax.numpy as jnp
from jax import lax
from jax.experimental import pallas as pl
from jax.experimental.pallas import tpu as pltpu

# MXU operand dtype (f32 accumulation via preferred_element_type). All elementwise
# math (LayerNorm, residuals, attention divide) stays f32 on every chip.
MXU_DTYPE = jnp.bfloat16

LN_EPS = 1e-6  # the PyTorch module explicitly uses eps=1e-06


def _default_vmem_limit():
    """Generation-aware VMEM cap: ~110 MiB on v5e/v6e (128 MiB phys), ~48 MiB on v7x."""
    try:
        cap = int(pltpu.get_tpu_info().vmem_capacity_bytes)
        return max(32 << 20, min(cap - (16 << 20), 110 << 20))
    except Exception:
        return 48 << 20


VMEM_LIMIT = _default_vmem_limit()


# --------------------------- small helpers ---------------------------------- #

def _round_up(x, m):
    return ((x + m - 1) // m) * m


def _pad_rows(a, target_rows, value=0):
    pad = target_rows - a.shape[0]
    if pad <= 0:
        return a
    widths = [(0, pad)] + [(0, 0)] * (a.ndim - 1)
    return jnp.pad(a, widths, constant_values=value)


def _onehot(ids, size, dtype):
    """ids: (T, 1) int32 -> (T, size) {0,1} matrix, built purely in registers."""
    iota = lax.broadcasted_iota(jnp.int32, (ids.shape[0], size), 1)
    return jnp.where(ids == iota, 1.0, 0.0).astype(dtype)


def _head_pool_mats_host(dim, heads, dtype):
    """hp (D,H): pools per-head dot products; hpT (H,D): expands per-head scalars.
    Built once on the host (constants), passed to the edge kernel as bf16 inputs."""
    depth = dim // heads
    d_i = jnp.arange(dim)[:, None]
    h_i = jnp.arange(heads)[None, :]
    hp = ((d_i >= h_i * depth) & (d_i < (h_i + 1) * depth)).astype(dtype)
    return hp, jnp.transpose(hp).astype(dtype)


def _layernorm(x, g, b, eps):
    mu = jnp.mean(x, axis=-1, keepdims=True)
    xc = x - mu
    var = jnp.mean(xc * xc, axis=-1, keepdims=True)
    return xc * lax.rsqrt(var + eps) * g + b


def _params(sem):
    return pltpu.CompilerParams(dimension_semantics=sem, vmem_limit_bytes=VMEM_LIMIT)


# ------------------------------ kernels ------------------------------------- #

def _node_qkv_kernel(x_ref, g_ref, b_ref, wqkv_ref, bqkv_ref, qkv_ref, *, eps):
    """LN1 + fused QKV projection; emits qkv in bf16. No accumulator -> 'parallel'."""
    xn = _layernorm(x_ref[...], g_ref[...], b_ref[...], eps)
    qkv = jnp.dot(xn.astype(MXU_DTYPE), wqkv_ref[...],
                  preferred_element_type=jnp.float32) + bqkv_ref[...]
    qkv_ref[...] = qkv.astype(qkv_ref.dtype)


def _edge_static_kernel(rel_ref, sp_ref, table_ref, w1_ref, b1_ref, w2t_ref, b2_ref,
                        relemb_ref, bias_ref, *, num_rel):
    """Layer-invariant edge features: rel embedding gather (bf16 out) + SpatialEncoding MLP."""
    oh_rel = _onehot(rel_ref[...], num_rel, MXU_DTYPE)                      # (tE, R)
    relemb_ref[...] = jnp.dot(oh_rel, table_ref[...],
                              preferred_element_type=jnp.float32).astype(relemb_ref.dtype)
    # SpatialEncoding: Linear(1,D) -> ReLU -> Linear(D,1) -> ReLU, kept in f32
    h = jnp.maximum(sp_ref[...] * w1_ref[...] + b1_ref[...], 0.0)           # (tE, D)
    bias_ref[...] = jnp.maximum(
        jnp.sum(h * w2t_ref[...], axis=-1, keepdims=True) + b2_ref[...], 0.0)


def _edge_attn_kernel(row_ref, col_ref, rel_ref, bias_ref, qkv_ref, hp_ref, hpt_ref,
                      attn_ref, agg_ref, ks_ref,
                      *, dim, heads, normalizer, n_real, e_real, tiles_per_half):
    """Gather q/k/v at col/row, attention num/dem, weighted scatter-add per core half."""
    c = pl.program_id(0)          # megacore half (parallel on v7x, sequential otherwise)
    e = pl.program_id(1)          # edge tile within the half (arbitrary -> accumulator)
    n_pad = qkv_ref.shape[0]
    te = row_ref.shape[0]

    @pl.when(e == 0)
    def _():
        # ks_sum = sum over *valid* nodes of k (padded node rows carry LN-bias garbage).
        node_valid = lax.broadcasted_iota(jnp.int32, (n_pad, 1), 0) < n_real
        k_all = qkv_ref[:, dim:2 * dim].astype(jnp.float32)
        ks_ref[...] = jnp.sum(jnp.where(node_valid, k_all, 0.0), axis=0, keepdims=True)
        agg_ref[...] = jnp.zeros_like(agg_ref)

    # One-hot gather matrices built in registers from int32 indices (VMEM-only).
    # TODO(synk): for graphs whose (N, 3D) bf16 qkv slab does not fit VMEM, switch to a
    # scalar-prefetch / manual-DMA row gather and tile the scatter over N.
    oh_col = _onehot(col_ref[...], n_pad, MXU_DTYPE)                        # (tE, N)
    oh_row = _onehot(row_ref[...], n_pad, MXU_DTYPE)                        # (tE, N)

    q_all = qkv_ref[:, 0:dim]                                               # (N, D) bf16
    kv_all = qkv_ref[:, dim:3 * dim]                                        # (N, 2D) bf16

    q_col = jnp.dot(oh_col, q_all, preferred_element_type=jnp.float32)      # q[col]
    kv_row = jnp.dot(oh_row, kv_all, preferred_element_type=jnp.float32)    # (tE, 2D)
    k_row = kv_row[:, 0:dim]                                                # k[row]
    v_row = kv_row[:, dim:2 * dim]                                          # v[row]

    rel = rel_ref[...].astype(jnp.float32)
    q_e = q_col + rel
    k_e = k_row + rel

    # numerator: per-edge per-head dot product * 1/H**0.25 + spatial bias
    num = jnp.dot((q_e * k_e).astype(MXU_DTYPE), hp_ref[...],
                  preferred_element_type=jnp.float32)                       # (tE, H)
    num = num * normalizer + bias_ref[...]
    # denominator: <q[col], sum_n k[n]> per head
    dem = jnp.dot((q_col * ks_ref[...]).astype(MXU_DTYPE), hp_ref[...],
                  preferred_element_type=jnp.float32)                       # (tE, H)
    attn = num / dem                                                        # exact divide

    # mask padded edges (they alias node 0 and must not scatter / emit attention)
    base = (c * tiles_per_half + e) * te
    edge_valid = (base + lax.broadcasted_iota(jnp.int32, (te, 1), 0)) < e_real
    attn = jnp.where(edge_valid, attn, 0.0)
    attn_ref[...] = attn

    # weighted scatter-add: agg[col[e]] += attn[e,h] * v[row[e], h, :]
    attn_exp = jnp.dot(attn.astype(MXU_DTYPE), hpt_ref[...],
                       preferred_element_type=jnp.float32)                  # (tE, D)
    msg = (attn_exp * v_row).astype(MXU_DTYPE)
    contrib = lax.dot_general(oh_col, msg, (((0,), (0,)), ((), ())),
                              preferred_element_type=jnp.float32)           # (N, D)
    agg_ref[...] += contrib


def _out_ffn_kernel(agg_ref, x_ref, wo_ref, bo_ref, g2_ref, b2_ref,
                    w1_ref, fb1_ref, w2_ref, fb2_ref, o_ref, *, eps):
    """Reduce 2 agg partials + Dense + residual, LN2, FFN(D->2D->D) + residual."""
    agg = (agg_ref[0] + agg_ref[1]).astype(MXU_DTYPE)
    attn_out = jnp.dot(agg, wo_ref[...], preferred_element_type=jnp.float32) + bo_ref[...]
    out1 = attn_out + x_ref[...]
    out1n = _layernorm(out1, g2_ref[...], b2_ref[...], eps)
    h = jnp.maximum(jnp.dot(out1n.astype(MXU_DTYPE), w1_ref[...],
                            preferred_element_type=jnp.float32) + fb1_ref[...], 0.0)
    ffn = jnp.dot(h.astype(MXU_DTYPE), w2_ref[...],
                  preferred_element_type=jnp.float32) + fb2_ref[...]
    o_ref[...] = out1 + ffn


def _mean_pool_kernel(batch_ref, x_ref, rep_ref, cnt_ref, *, num_graphs):
    """global_mean_pool accumulated over node tiles; padded nodes carry batch==G -> masked."""
    i = pl.program_id(0)
    tn = batch_ref.shape[0]
    oh = _onehot(batch_ref[...], num_graphs, jnp.float32)                   # (tN, G)

    @pl.when(i == 0)
    def _():
        rep_ref[...] = jnp.zeros_like(rep_ref)
        cnt_ref[...] = jnp.zeros_like(cnt_ref)

    rep_ref[...] += lax.dot_general(oh, x_ref[...], (((0,), (0,)), ((), ())),
                                    preferred_element_type=jnp.float32)     # (G, D)
    cnt_ref[...] += lax.dot_general(oh, jnp.ones((tn, 1), jnp.float32),
                                    (((0,), (0,)), ((), ())),
                                    preferred_element_type=jnp.float32)     # (G, 1)

    @pl.when(i == pl.num_programs(0) - 1)
    def _():
        rep_ref[...] = rep_ref[...] / jnp.maximum(cnt_ref[...], 1.0)


# --------------------------- pallas_call wrappers ---------------------------- #

def _node_qkv_call(x, ln_g, ln_b, w_qkv_bf, b_qkv, *, tile):
    N, D = x.shape
    D3 = w_qkv_bf.shape[1]
    return pl.pallas_call(
        partial(_node_qkv_kernel, eps=LN_EPS),
        out_shape=jax.ShapeDtypeStruct((N, D3), MXU_DTYPE),
        grid=(N // tile,),
        in_specs=[pl.BlockSpec((tile, D), lambda i: (i, 0)),
                  pl.BlockSpec((1, D), lambda i: (0, 0)),
                  pl.BlockSpec((1, D), lambda i: (0, 0)),
                  pl.BlockSpec((D, D3), lambda i: (0, 0)),
                  pl.BlockSpec((1, D3), lambda i: (0, 0))],
        out_specs=pl.BlockSpec((tile, D3), lambda i: (i, 0)),
        compiler_params=_params(("parallel",)),
    )(x, ln_g, ln_b, w_qkv_bf, b_qkv)


def _edge_static_call(rel2d, sp2d, rel_table_bf, sp_w1, sp_b1, sp_w2t, sp_b2, *, tile):
    E = rel2d.shape[0]
    R, D = rel_table_bf.shape
    return pl.pallas_call(
        partial(_edge_static_kernel, num_rel=R),
        out_shape=(jax.ShapeDtypeStruct((E, D), MXU_DTYPE),
                   jax.ShapeDtypeStruct((E, 1), jnp.float32)),
        grid=(E // tile,),
        in_specs=[pl.BlockSpec((tile, 1), lambda e: (e, 0)),
                  pl.BlockSpec((tile, 1), lambda e: (e, 0)),
                  pl.BlockSpec((R, D), lambda e: (0, 0)),
                  pl.BlockSpec((1, D), lambda e: (0, 0)),
                  pl.BlockSpec((1, D), lambda e: (0, 0)),
                  pl.BlockSpec((1, D), lambda e: (0, 0)),
                  pl.BlockSpec((1, 1), lambda e: (0, 0))],
        out_specs=(pl.BlockSpec((tile, D), lambda e: (e, 0)),
                   pl.BlockSpec((tile, 1), lambda e: (e, 0))),
        compiler_params=_params(("parallel",)),
    )(rel2d, sp2d, rel_table_bf, sp_w1, sp_b1, sp_w2t, sp_b2)


def _edge_attn_call(row2d, col2d, rel_emb_e, bias_e, qkv, hp, hpT,
                    *, heads, tile, n_real, e_real):
    E_pad = row2d.shape[0]
    N_pad, D3 = qkv.shape
    D = D3 // 3
    tiles_per_half = E_pad // (2 * tile)
    normalizer = 1.0 / math.sqrt(math.sqrt(float(heads)))   # shape[-1] == num_heads
    edge_idx = lambda c, e: (c * tiles_per_half + e, 0)
    # TODO(synk): attn last dim (= num_heads) is lane-sparse; acceptable since the
    # volume is tiny, but could be packed to 128 lanes if it ever matters.
    return pl.pallas_call(
        partial(_edge_attn_kernel, dim=D, heads=heads, normalizer=normalizer,
                n_real=n_real, e_real=e_real, tiles_per_half=tiles_per_half),
        out_shape=(jax.ShapeDtypeStruct((E_pad, heads), jnp.float32),
                   jax.ShapeDtypeStruct((2, N_pad, D), jnp.float32)),
        grid=(2, tiles_per_half),
        in_specs=[pl.BlockSpec((tile, 1), edge_idx),          # row
                  pl.BlockSpec((tile, 1), edge_idx),          # col
                  pl.BlockSpec((tile, D), edge_idx),          # rel embedding (bf16)
                  pl.BlockSpec((tile, 1), edge_idx),          # spatial bias
                  pl.BlockSpec((N_pad, D3), lambda c, e: (0, 0)),   # qkv (bf16, resident)
                  pl.BlockSpec((D, heads), lambda c, e: (0, 0)),    # hp (host constant)
                  pl.BlockSpec((heads, D), lambda c, e: (0, 0))],   # hpT (host constant)
        out_specs=(pl.BlockSpec((tile, heads), edge_idx),
                   pl.BlockSpec((None, N_pad, D), lambda c, e: (c, 0, 0))),  # per-half agg
        scratch_shapes=[pltpu.VMEM((1, D), jnp.float32)],      # ks_sum (per core)
        compiler_params=_params(("parallel", "arbitrary")),
    )(row2d, col2d, rel_emb_e, bias_e, qkv, hp, hpT)


def _out_ffn_call(agg2, x, wo_bf, bo, ln2_g, ln2_b, f1_bf, fb1, f2_bf, fb2, *, tile):
    N, D = x.shape
    Dff = f1_bf.shape[1]
    return pl.pallas_call(
        partial(_out_ffn_kernel, eps=LN_EPS),
        out_shape=jax.ShapeDtypeStruct((N, D), jnp.float32),
        grid=(N // tile,),
        in_specs=[pl.BlockSpec((2, tile, D), lambda i: (0, i, 0)),  # both agg halves
                  pl.BlockSpec((tile, D), lambda i: (i, 0)),
                  pl.BlockSpec((D, D), lambda i: (0, 0)),
                  pl.BlockSpec((1, D), lambda i: (0, 0)),
                  pl.BlockSpec((1, D), lambda i: (0, 0)),
                  pl.BlockSpec((1, D), lambda i: (0, 0)),
                  pl.BlockSpec((D, Dff), lambda i: (0, 0)),
                  pl.BlockSpec((1, Dff), lambda i: (0, 0)),
                  pl.BlockSpec((Dff, D), lambda i: (0, 0)),
                  pl.BlockSpec((1, D), lambda i: (0, 0))],
        out_specs=pl.BlockSpec((tile, D), lambda i: (i, 0)),
        compiler_params=_params(("parallel",)),
    )(agg2, x, wo_bf, bo, ln2_g, ln2_b, f1_bf, fb1, f2_bf, fb2)


def _mean_pool_call(batch2d, x, num_graphs, *, tile):
    N, D = x.shape
    return pl.pallas_call(
        partial(_mean_pool_kernel, num_graphs=num_graphs),
        out_shape=jax.ShapeDtypeStruct((num_graphs, D), jnp.float32),
        grid=(N // tile,),
        in_specs=[pl.BlockSpec((tile, 1), lambda i: (i, 0)),
                  pl.BlockSpec((tile, D), lambda i: (i, 0))],
        out_specs=pl.BlockSpec((num_graphs, D), lambda i: (0, 0)),
        scratch_shapes=[pltpu.VMEM((num_graphs, 1), jnp.float32)],
        compiler_params=_params(("arbitrary",)),
    )(batch2d, x)


# ------------------------------ parameters ----------------------------------- #

def init_params(key, D, H, R, layer_num):
    keys = iter(jax.random.split(key, 64))

    def lin(kin, kout):
        bound = 1.0 / math.sqrt(kin)
        w = jax.random.uniform(next(keys), (kin, kout), jnp.float32, -bound, bound)
        b = jax.random.uniform(next(keys), (kout,), jnp.float32, -bound, bound)
        return w, b.reshape(1, kout)

    params = {"rel_emb": jax.random.normal(next(keys), (R, D), jnp.float32)}
    # SpatialEncoding: Linear(1,D) -> ReLU -> Linear(D,1) -> ReLU (shared across layers)
    params["sp_w1"], params["sp_b1"] = lin(1, D)          # (1, D), (1, D)
    w2, b2 = lin(D, 1)
    params["sp_w2t"] = w2.T                                # stored transposed: (1, D)
    params["sp_b2"] = b2                                   # (1, 1)

    layers = []
    for _ in range(layer_num - 1):
        lp = {"ln1_g": jnp.ones((1, D), jnp.float32), "ln1_b": jnp.zeros((1, D), jnp.float32),
              "ln2_g": jnp.ones((1, D), jnp.float32), "ln2_b": jnp.zeros((1, D), jnp.float32)}
        wq, bq = lin(D, D)
        wk, bk = lin(D, D)
        wv, bv = lin(D, D)
        lp["w_qkv"] = jnp.concatenate([wq, wk, wv], axis=1)   # fused (D, 3D) projection
        lp["b_qkv"] = jnp.concatenate([bq, bk, bv], axis=1)   # (1, 3D)
        lp["wo"], lp["bo"] = lin(D, D)                        # MultiheadAttention.dense
        lp["f1"], lp["fb1"] = lin(D, 2 * D)                   # ffn Linear(D, 2D)
        lp["f2"], lp["fb2"] = lin(2 * D, D)                   # ffn Linear(2D, D)
        layers.append(lp)
    params["layers"] = layers
    return params


# ------------------------------ forward pass --------------------------------- #

def graph_transformer_forward(feature, sp_edge_index, sp_value, sp_edge_rel,
                              batch, num_graphs, params, num_heads,
                              node_tile_pref=256, edge_tile_pref=256):
    N, D = feature.shape
    E = sp_edge_index.shape[1]

    # Tile selection + host-side padding (padded rows are masked in-kernel).
    tN = min(_round_up(node_tile_pref, 8), _round_up(N, 8))
    N_pad = _round_up(N, tN)
    tE = min(_round_up(edge_tile_pref, 8), _round_up(E, 8))
    E_pad = _round_up(E, 2 * tE)          # 2-way megacore split needs whole tiles/half

    row2d = _pad_rows(sp_edge_index[0].astype(jnp.int32).reshape(E, 1), E_pad)
    col2d = _pad_rows(sp_edge_index[1].astype(jnp.int32).reshape(E, 1), E_pad)
    rel2d = _pad_rows(sp_edge_rel.astype(jnp.int32).reshape(E, 1), E_pad)
    sp2d = _pad_rows(sp_value.astype(jnp.float32).reshape(E, 1), E_pad)
    batch2d = _pad_rows(batch.astype(jnp.int32).reshape(N, 1), N_pad, value=num_graphs)
    x = _pad_rows(feature.astype(jnp.float32), N_pad)

    # Host-built constants (cast matmul weights to bf16 once per call).
    hp, hpT = _head_pool_mats_host(D, num_heads, MXU_DTYPE)
    rel_table_bf = params["rel_emb"].astype(MXU_DTYPE)

    # Layer-invariant edge features (identical in every reference layer) -> once.
    rel_emb_e, edge_bias = _edge_static_call(
        rel2d, sp2d, rel_table_bf, params["sp_w1"], params["sp_b1"],
        params["sp_w2t"], params["sp_b2"], tile=tE)

    attn_layer = []
    # TODO(synk): the out/FFN kernel of layer l and the node/QKV kernel of layer l+1
    # share the same N-tiled grid and could be fused to save one (N,D) HBM round trip.
    for lp in params["layers"]:
        w_qkv_bf = lp["w_qkv"].astype(MXU_DTYPE)
        wo_bf = lp["wo"].astype(MXU_DTYPE)
        f1_bf = lp["f1"].astype(MXU_DTYPE)
        f2_bf = lp["f2"].astype(MXU_DTYPE)

        qkv = _node_qkv_call(x, lp["ln1_g"], lp["ln1_b"], w_qkv_bf, lp["b_qkv"], tile=tN)
        attn_w, agg2 = _edge_attn_call(row2d, col2d, rel_emb_e, edge_bias,
                                       qkv, hp, hpT, heads=num_heads, tile=tE,
                                       n_real=N, e_real=E)
        x = _out_ffn_call(agg2, x, wo_bf, lp["bo"], lp["ln2_g"], lp["ln2_b"],
                          f1_bf, lp["fb1"], f2_bf, lp["fb2"], tile=tN)
        attn_layer.append(attn_w[:E])                      # drop padded edges

    # type == 'graph': global mean pool over the nodes of each graph.
    representation = _mean_pool_call(batch2d, x, num_graphs, tile=tN)

    x_real = x[:N]
    # TODO(synk): PyG data.to_data_list()/Batch ragged splitting has no Pallas
    # equivalent; boolean-mask indexing is host-side glue (not jit-compatible).
    sub_representation = [x_real[batch == g] for g in range(num_graphs)]
    return representation, sub_representation, attn_layer


# ---------------------------------- main ------------------------------------- #

if __name__ == "__main__":
    key = jax.random.PRNGKey(0)
    # small shapes matching the module defaults (embedding_dim=64, num_heads=4,
    # num_rel=10, layer_num=3 -> 2 encoder layers); N, E deliberately non-tile-aligned
    # to exercise the host padding + in-kernel masking paths.
    N, D, H, R, E, G = 60, 64, 4, 10, 600, 2
    layer_num = 3

    k1, k2, k3, k4, k5, kp = jax.random.split(key, 6)
    feature = jax.random.normal(k1, (N, D), jnp.float32)
    row = jax.random.randint(k2, (E,), 0, N)
    col = jax.random.randint(k3, (E,), 0, N)
    sp_edge_index = jnp.stack([row, col])                       # (2, E)
    sp_value = jax.random.uniform(k4, (E,), jnp.float32)        # (E,)
    sp_edge_rel = jax.random.randint(k5, (E,), 0, R)            # (E,)
    batch = jnp.concatenate([jnp.zeros(N // 2, jnp.int32),
                             jnp.ones(N - N // 2, jnp.int32)])  # (N,)

    params = init_params(kp, D, H, R, layer_num)

    rep, subs, attns = graph_transformer_forward(
        feature, sp_edge_index, sp_value, sp_edge_rel, batch, G, params, H,
        node_tile_pref=128, edge_tile_pref=128)

    jax.block_until_ready(rep)
    for a in attns:
        jax.block_until_ready(a)
    for s in subs:
        jax.block_until_ready(s)

    assert rep.shape == (G, D)
    assert len(attns) == layer_num - 1 and attns[0].shape == (E, H)
    assert len(subs) == G
    print("KERNEL_OK")
</pallas_src>

<mosaic_0001>
module attributes {stable_mosaic.version = 11 : i64} {
  func.func @_edge_static_kernel(%arg0: i32, %arg1: memref<128x1xi32, #tpu.memory_space<vmem>>, %arg2: memref<128x1xf32, #tpu.memory_space<vmem>>, %arg3: memref<10x64xbf16, #tpu.memory_space<vmem>>, %arg4: memref<1x64xf32, #tpu.memory_space<vmem>>, %arg5: memref<1x64xf32, #tpu.memory_space<vmem>>, %arg6: memref<1x64xf32, #tpu.memory_space<vmem>>, %arg7: memref<1x1xf32, #tpu.memory_space<vmem>>, %arg8: memref<128x64xbf16, #tpu.memory_space<vmem>>, %arg9: memref<128x1xf32, #tpu.memory_space<vmem>>) attributes {dimension_semantics = [#tpu.dimension_semantics<parallel>], iteration_bounds = array<i64: 6>, scalar_prefetch = 0 : i64, scratch_operands = 0 : i64, tpu.core_type = #tpu.core_type<tc>, window_params = [{transform_indices = @transform_0, window_bounds = array<i64: 128, 1>}, {transform_indices = @transform_1, window_bounds = array<i64: 128, 1>}, {pipeline_mode = #tpu.pipeline_mode<synchronous>, transform_indices = @transform_2, window_bounds = array<i64: 10, 64>}, {pipeline_mode = #tpu.pipeline_mode<synchronous>, transform_indices = @transform_3, window_bounds = array<i64: 1, 64>}, {pipeline_mode = #tpu.pipeline_mode<synchronous>, transform_indices = @transform_4, window_bounds = array<i64: 1, 64>}, {pipeline_mode = #tpu.pipeline_mode<synchronous>, transform_indices = @transform_5, window_bounds = array<i64: 1, 64>}, {pipeline_mode = #tpu.pipeline_mode<synchronous>, transform_indices = @transform_6, window_bounds = array<i64: 1, 1>}, {transform_indices = @transform_7, window_bounds = array<i64: 128, 64>}, {transform_indices = @transform_8, window_bounds = array<i64: 128, 1>}]} {
    %c0 = arith.constant 0 : index
    %c0_0 = arith.constant 0 : index
    %0 = vector.load %arg1[%c0, %c0_0] : memref<128x1xi32, #tpu.memory_space<vmem>>, vector<128x1xi32>
    %1 = tpu.iota {dimensions = array<i32: 1>} : vector<128x10xi32>
    %2 = vector.broadcast %0 : vector<128x1xi32> to vector<128x10xi32>
    %3 = arith.cmpi eq, %2, %1 : vector<128x10xi32>
    %cst = arith.constant 1.000000e+00 : f32
    %cst_1 = arith.constant 0.000000e+00 : f32
    %4 = vector.broadcast %cst : f32 to vector<128x10xf32>
    %5 = vector.broadcast %cst_1 : f32 to vector<128x10xf32>
    %6 = arith.select %3, %4, %5 : vector<128x10xi1>, vector<128x10xf32>
    %7 = arith.truncf %6 : vector<128x10xf32> to vector<128x10xbf16>
    %c0_2 = arith.constant 0 : index
    %c0_3 = arith.constant 0 : index
    %8 = vector.load %arg3[%c0_2, %c0_3] : memref<10x64xbf16, #tpu.memory_space<vmem>>, vector<10x64xbf16>
    %cst_4 = arith.constant dense<0.000000e+00> : vector<128x64xf32>
    %9 = tpu.matmul %7, %8, %cst_4 {dimension_numbers = #tpu.dot_dimension_numbers<[1], [0], [0], [1], [0, 0, 1, 1], [], []>} : vector<128x10xbf16>, vector<10x64xbf16>, vector<128x64xf32> -> vector<128x64xf32>
    %10 = arith.truncf %9 : vector<128x64xf32> to vector<128x64xbf16>
    %c0_5 = arith.constant 0 : index
    %c0_6 = arith.constant 0 : index
    %11 = vector.load %arg8[%c0_5, %c0_6] : memref<128x64xbf16, #tpu.memory_space<vmem>>, vector<128x64xbf16>
    tpu.vector_store %arg8[%c0_5, %c0_6], %10 {strides = array<i32>} : memref<128x64xbf16, #tpu.memory_space<vmem>>, vector<128x64xbf16>,
    %c0_7 = arith.constant 0 : index
    %c0_8 = arith.constant 0 : index
    %12 = vector.load %arg2[%c0_7, %c0_8] : memref<128x1xf32, #tpu.memory_space<vmem>>, vector<128x1xf32>
    %c0_9 = arith.constant 0 : index
    %c0_10 = arith.constant 0 : index
    %13 = vector.load %arg4[%c0_9, %c0_10] : memref<1x64xf32, #tpu.memory_space<vmem>>, vector<1x64xf32>
    %14 = vector.broadcast %12 : vector<128x1xf32> to vector<128x64xf32>
    %15 = vector.broadcast %13 : vector<1x64xf32> to vector<128x64xf32>
    %16 = arith.mulf %14, %15 : vector<128x64xf32>
    %c0_11 = arith.constant 0 : index
    %c0_12 = arith.constant 0 : index
    %17 = vector.load %arg5[%c0_11, %c0_12] : memref<1x64xf32, #tpu.memory_space<vmem>>, vector<1x64xf32>
    %18 = vector.broadcast %17 : vector<1x64xf32> to vector<128x64xf32>
    %19 = arith.addf %16, %18 : vector<128x64xf32>
    %cst_13 = arith.constant 0.000000e+00 : f32
    %20 = vector.broadcast %cst_13 : f32 to vector<128x64xf32>
    %21 = arith.maximumf %19, %20 : vector<128x64xf32>
    %c0_14 = arith.constant 0 : index
    %c0_15 = arith.constant 0 : index
    %22 = vector.load %arg6[%c0_14, %c0_15] : memref<1x64xf32, #tpu.memory_space<vmem>>, vector<1x64xf32>
    %23 = vector.broadcast %22 : vector<1x64xf32> to vector<128x64xf32>
    %24 = arith.mulf %21, %23 : vector<128x64xf32>
    %cst_16 = arith.constant dense<0.000000e+00> : vector<128xf32>
    %25 = vector.multi_reduction <add>, %24, %cst_16 [1] : vector<128x64xf32> to vector<128xf32>
    %26 = vector.shape_cast %25 : vector<128xf32> to vector<128x1xf32>
    %c0_17 = arith.constant 0 : index
    %c0_18 = arith.constant 0 : index
    %27 = vector.load %arg7[%c0_17, %c0_18] : memref<1x1xf32, #tpu.memory_space<vmem>>, vector<1x1xf32>
    %28 = vector.broadcast %27 : vector<1x1xf32> to vector<128x1xf32>
    %29 = arith.addf %26, %28 : vector<128x1xf32>
    %cst_19 = arith.constant 0.000000e+00 : f32
    %30 = vector.broadcast %cst_19 : f32 to vector<128x1xf32>
    %31 = arith.maximumf %29, %30 : vector<128x1xf32>
    %c0_20 = arith.constant 0 : index
    %c0_21 = arith.constant 0 : index
    %32 = vector.load %arg9[%c0_20, %c0_21] : memref<128x1xf32, #tpu.memory_space<vmem>>, vector<128x1xf32>
    tpu.vector_store %arg9[%c0_20, %c0_21], %31 {strides = array<i32>} : memref<128x1xf32, #tpu.memory_space<vmem>>, vector<128x1xf32>,
    return
  }
  func.func @transform_0(%arg0: i32) -> (i32, i32) {
    %c0_i32 = arith.constant 0 : i32
    %c0_i32_0 = arith.constant 0 : i32
    return %arg0, %c0_i32 : i32, i32
  }
  func.func @transform_1(%arg0: i32) -> (i32, i32) {
    %c0_i32 = arith.constant 0 : i32
    %c0_i32_0 = arith.constant 0 : i32
    return %arg0, %c0_i32 : i32, i32
  }
  func.func @transform_2(%arg0: i32) -> (i32, i32) {
    %c0_i32 = arith.constant 0 : i32
    %c0_i32_0 = arith.constant 0 : i32
    %c0_i32_1 = arith.constant 0 : i32
    return %c0_i32, %c0_i32_0 : i32, i32
  }
  func.func @transform_3(%arg0: i32) -> (i32, i32) {
    %c0_i32 = arith.constant 0 : i32
    %c0_i32_0 = arith.constant 0 : i32
    %c0_i32_1 = arith.constant 0 : i32
    return %c0_i32, %c0_i32_0 : i32, i32
  }
  func.func @transform_4(%arg0: i32) -> (i32, i32) {
    %c0_i32 = arith.constant 0 : i32
    %c0_i32_0 = arith.constant 0 : i32
    %c0_i32_1 = arith.constant 0 : i32
    return %c0_i32, %c0_i32_0 : i32, i32
  }
  func.func @transform_5(%arg0: i32) -> (i32, i32) {
    %c0_i32 = arith.constant 0 : i32
    %c0_i32_0 = arith.constant 0 : i32
    %c0_i32_1 = arith.constant 0 : i32
    return %c0_i32, %c0_i32_0 : i32, i32
  }
  func.func @transform_6(%arg0: i32) -> (i32, i32) {
    %c0_i32 = arith.constant 0 : i32
    %c0_i32_0 = arith.constant 0 : i32
    %c0_i32_1 = arith.constant 0 : i32
    return %c0_i32, %c0_i32_0 : i32, i32
  }
  func.func @transform_7(%arg0: i32) -> (i32, i32) {
    %c0_i32 = arith.constant 0 : i32
    %c0_i32_0 = arith.constant 0 : i32
    return %arg0, %c0_i32 : i32, i32
  }
  func.func @transform_8(%arg0: i32) -> (i32, i32) {
    %c0_i32 = arith.constant 0 : i32
    %c0_i32_0 = arith.constant 0 : i32
    return %arg0, %c0_i32 : i32, i32
  }
}

</mosaic_0001>

<bundles_post_ra>
// kernel: tpu_custom_call.1
= control target key start
LH: loop header
LB: loop body
LE: loop exit
PB: predicated region body
PF: predicated region fallthrough
CT: control target
= control target key end

     0   :  { %s1218_s29 = smov 0   ;;  %s1480_s0 = inlined_call_operand.vmem [shape: s32[768,1], index: 0, kind: input, shape index: {}]   ;;  %s1481_s1 = inlined_call_operand.vmem [shape: f32[768,1], index: 1, kind: input, shape index: {}]   ;;  %s1482_s2 = inlined_call_operand.vmem [shape: bf16[10,64], index: 2, kind: input, shape index: {}]   ;;  %s1483_s3 = inlined_call_operand.vmem [shape: f32[1,64], index: 3, kind: input, shape index: {}]   ;;  %s1484_s4 = inlined_call_operand.vmem [shape: f32[1,64], index: 4, kind: input, shape index: {}]   ;;  %s1485_s5 = inlined_call_operand.vmem [shape: f32[1,64], index: 5, kind: input, shape index: {}]   ;;  %s1486_s6 = inlined_call_operand.<no memory space> [shape: f32[1,1], index: 6, kind: input, shape index: {}]   ;;  %s1487_s7 = inlined_call_operand.vmem [shape: bf16[768,64], index: 7, kind: output, shape index: {0}]   ;;  %s1488_s8 = inlined_call_operand.vmem [shape: f32[768,1], index: 8, kind: output, shape index: {1}]  }
   0x1   :  { %v14_v0 = vstv %s1486_s6 }
   0x2   :  { %15 = vst [vmem:[#allocation2] sm:$0x1] %v14_v0 }
   0x3 LB: > { %s1056_s30 = sadd.s32 4294967295, %s1166_s29   ;;  %p1060_p0 = scmp.ge.s32.totalorder %s1166_s29, 1  ;;  %s1166_s29 = sphi %s1218_s29, %s21_s29  }
   0x4   : > { %p279_p1 = scmp.lt.s32.totalorder %s1166_s29, 7 }
   0x6   : > { %p280_p2 = pnand %p1060_p0, %p279_p1 }
   0x7   : > { %s1061_s9 = sshll.u32 (!%p280_p2), %s1056_s30, 4 }
   0x8   : > { %283 = sbr.rel (%p280_p2) target bundleno = 376 (0x178), region = 48  ;;  %p324_p3 = scmp.lt.s32.totalorder (!%p280_p2), %s1061_s9, 95 }
   0xd   : > { %v1168_v1 = vmov 0   ;;  %s1490_s9 = smov (!%p324_p3, %s1061_s9), 95  ;;  %vm486_vm0 = vcmask 1044480   ;;  %v1159_v10 = vld [vmem:[%s1482_s2] sm:$0x1f]   ;;  %v364_v36 = vlaneseq  ;;  %vm461_vm5 = vcmask 80896  }
   0xe   : > { %1158 = vset.pattern.permute.xlu1 %v1168_v1  ;;  %1157 = vset.pattern.permute.xlu0 %v1168_v1  ;;  %s1229_s6 = sshll.u32 %s1490_s9, 3  ;;  %v488_v11 = vsel %vm486_vm0, %v1159_v10, 0  ;;  %v1169_v42 = vmov 0.0   ;;  %s1066_s27 = sshll.u32 %s1490_s9, 2 }
   0xf   : > { %s1235_s12 = scalar_lea.vmem %s1480_s0, %s1229_s6  ;;  %1145 = vmatprep.subr.msk.bf16.mxu0 %vm486_vm0, %v1159_v10  ;;  %1146 = vmatprep.subr.msk.bf16.mxu1 %vm486_vm0, %v1159_v10  ;;  %s1260_s17 = scalar_lea.vmem %s1481_s1, %s1229_s6  ;;  %v1278_v37 = vand.u32 127, %v364_v36 }
  0x10   : > { %v356_v2 = vld [vmem:[%s1235_s12 + $0x40] sm:$0xff]  ;;  %v357_v4 = vld [vmem:[%s1235_s12 + $0x48] sm:$0xff]  ;;  %v351_v6 = vld [vmem:[%s1235_s12 + $0x18] sm:$0xff]  ;;  %1126 = vmatpush3.bf16.msra.mxu0 %v488_v11  ;;  %1144 = vmatpush3.bf16.msra.mxu1 %v488_v11  ;;  %s1391_s26 = scalar_lea.vmem %s1488_s8, %s1229_s6  ;;  %s1430_s6 = scalar_lea.vmem %s1487_s7, %s1066_s27 }
  0x11   : > { %v348_v3 = vld [vmem:[%s1235_s12] sm:$0xff]  ;;  %391 = vperm.xlu1 %1158, %v356_v2   ;;  %v349_v5 = vld [vmem:[%s1235_s12 + $0x8] sm:$0xff]  ;;  %v350_v7 = vld [vmem:[%s1235_s12 + $0x10] sm:$0xff] }
  0x12   : > { %367 = vperm.xlu0 %1157, %v348_v3   ;;  %v359_v8 = vld [vmem:[%s1235_s12 + $0x58] sm:$0xff]  ;;  %v358_v9 = vld [vmem:[%s1235_s12 + $0x50] sm:$0xff]  ;;  %v353_v12 = vld [vmem:[%s1235_s12 + $0x28] sm:$0xff] }
  0x13   : > { %v352_v13 = vld [vmem:[%s1235_s12 + $0x20] sm:$0xff]  ;;  %v361_v14 = vld [vmem:[%s1235_s12 + $0x68] sm:$0xff]  ;;  %v355_v16 = vld [vmem:[%s1235_s12 + $0x38] sm:$0xff] }
  0x14   : > { %v360_v15 = vld [vmem:[%s1235_s12 + $0x60] sm:$0xff]  ;;  %v354_v17 = vld [vmem:[%s1235_s12 + $0x30] sm:$0xff]  ;;  %v363_v18 = vld [vmem:[%s1235_s12 + $0x78] sm:$0xff] }
  0x15   : > { %394 = vperm.xlu1 %1158, %v357_v4   ;;  %v362_v19 = vld [vmem:[%s1235_s12 + $0x70] sm:$0xff]  ;;  %v669_v20 = vld [vmem:[%s1260_s17 + $0x8] sm:$0xff]  ;;  %v668_v21 = vld [vmem:[%s1260_s17] sm:$0xff] }
  0x16   : > { %370 = vperm.xlu0 %1157, %v349_v5   ;;  %v671_v22 = vld [vmem:[%s1260_s17 + $0x18] sm:$0xff]  ;;  %v670_v23 = vld [vmem:[%s1260_s17 + $0x10] sm:$0xff]  ;;  %v673_v24 = vld [vmem:[%s1260_s17 + $0x28] sm:$0xff] }
  0x17   : > { %v672_v25 = vld [vmem:[%s1260_s17 + $0x20] sm:$0xff]  ;;  %v675_v26 = vld [vmem:[%s1260_s17 + $0x38] sm:$0xff]  ;;  %v674_v27 = vld [vmem:[%s1260_s17 + $0x30] sm:$0xff] }
  0x18   : > { %v677_v28 = vld [vmem:[%s1260_s17 + $0x48] sm:$0xff]  ;;  %v676_v29 = vld [vmem:[%s1260_s17 + $0x40] sm:$0xff]  ;;  %v679_v30 = vld [vmem:[%s1260_s17 + $0x58] sm:$0xff] }
  0x19   : > { %376 = vperm.xlu1 %1158, %v351_v6   ;;  %v678_v31 = vld [vmem:[%s1260_s17 + $0x50] sm:$0xff]  ;;  %v681_v32 = vld [vmem:[%s1260_s17 + $0x68] sm:$0xff]  ;;  %v680_v33 = vld [vmem:[%s1260_s17 + $0x60] sm:$0xff] }
  0x1a   : > { %373 = vperm.xlu0 %1157, %v350_v7   ;;  %v683_v34 = vld [vmem:[%s1260_s17 + $0x78] sm:$0xff]  ;;  %v682_v35 = vld [vmem:[%s1260_s17 + $0x70] sm:$0xff] }
  0x1d   : > { %400 = vperm.xlu1 %1158, %v359_v8  }
  0x1e   : > { %397 = vperm.xlu0 %1157, %v358_v9  }
  0x21   : > { %382 = vperm.xlu1 %1158, %v353_v12  }
  0x22   : > { %379 = vperm.xlu0 %1157, %v352_v13  }
  0x25   : > { %406 = vperm.xlu1 %1158, %v361_v14   ;;  %v1306_v14 = vld [vmem:[%s1483_s3] ss:$0 sm:$0xff] }
  0x26   : > { %403 = vperm.xlu0 %1157, %v360_v15  }
  0x29   : > { %388 = vperm.xlu1 %1158, %v355_v16   ;;  %v1311_v16 = vld [vmem:[%s1484_s4] ss:$0 sm:$0xff] }
  0x2a   : > { %385 = vperm.xlu0 %1157, %v354_v17  }
  0x2d   : > { %412 = vperm.xlu1 %1158, %v363_v18  }
  0x2e   : > { %409 = vperm.xlu0 %1157, %v362_v19  }
  0x31   : > { %692 = vperm.xlu1 %1158, %v669_v20  }
  0x32   : > { %687 = vperm.xlu0 %1157, %v668_v21  }
  0x35   : > { %702 = vperm.xlu1 %1158, %v671_v22  }
  0x36   : > { %697 = vperm.xlu0 %1157, %v670_v23  }
  0x39   : > { %712 = vperm.xlu1 %1158, %v673_v24  }
  0x3a   : > { %707 = vperm.xlu0 %1157, %v672_v25   ;;  %v1321_v25 = vld [vmem:[%s1485_s5] ss:$0 sm:$0xff] }
  0x3d   : > { %722 = vperm.xlu1 %1158, %v675_v26  }
  0x3e   : > { %717 = vperm.xlu0 %1157, %v674_v27  }
  0x41   : > { %732 = vperm.xlu1 %1158, %v677_v28  }
  0x42   : > { %727 = vperm.xlu0 %1157, %v676_v29  }
  0x45   : > { %742 = vperm.xlu1 %1158, %v679_v30  }
  0x46   : > { %737 = vperm.xlu0 %1157, %v678_v31  }
  0x49   : > { %752 = vperm.xlu1 %1158, %v681_v32  }
  0x4a   : > { %747 = vperm.xlu0 %1157, %v680_v33  }
  0x4d   : > { %762 = vperm.xlu1 %1158, %v683_v34  }
  0x4e   : > { %757 = vperm.xlu0 %1157, %v682_v35  }
  0x8c   : > { %v392_v38 = vpop.permute.xlu1 %391 }
  0x8d   : > { %v368_v39 = vpop.permute.xlu0 %367  ;;  %vm422_vm1 = vcmp.eq.s32.totalorder %v392_v38, %v1278_v37 }
  0x8e   : > { %vm414_vm2 = vcmp.eq.s32.totalorder %v368_v39, %v1278_v37  ;;  %v438_v43 = vsel %vm422_vm1, 1.0, %v1169_v42 }
  0x8f   : > { %v430_v44 = vsel %vm414_vm2, 1.0, %v1169_v42  ;;  %vm849_vm2 = vcmask 523264  }
  0x90   : > { %v395_v40 = vpop.permute.xlu1 %394 }
  0x91   : > { %v371_v41 = vpop.permute.xlu0 %370  ;;  %vm423_vm3 = vcmp.eq.s32.totalorder %v395_v40, %v1278_v37 }
  0x92   : > { %vm415_vm4 = vcmp.eq.s32.totalorder %v371_v41, %v1278_v37  ;;  %v439_v45 = vsel %vm423_vm3, 1.0, %v1169_v42  ;;  %vm937_vm3 = vcmask 7168  }
  0x93   : > { %v431_v46 = vsel %vm415_vm4, 1.0, %v1169_v42  ;;  %v450_v48 = vpack.c.bf16 %v439_v45, %v438_v43  ;;  %vm651_vm4 = vcmask 519168  }
  0x94   : > { %v446_v47 = vpack.c.bf16 %v431_v46, %v430_v44  ;;  %v377_v49 = vpop.permute.xlu1 %376 }
  0x95   : > { %v374_v50 = vpop.permute.xlu0 %373  ;;  %vm417_vm6 = vcmp.eq.s32.totalorder %v377_v49, %v1278_v37  ;;  %1135 = vmatprep.mubr.msk.bf16.mxu1 %vm461_vm5, %v450_v48 }
  0x96   : > { %vm416_vm7 = vcmp.eq.s32.totalorder %v374_v50, %v1278_v37  ;;  %1127 = vmatprep.mubr.msk.bf16.mxu0 %vm461_vm5, %v446_v47  ;;  %v433_v51 = vsel %vm417_vm6, 1.0, %v1169_v42 }
  0x97   : > { %v432_v52 = vsel %vm416_vm7, 1.0, %v1169_v42 }
  0x98   : > { %v447_v53 = vpack.c.bf16 %v433_v51, %v432_v52  ;;  %v401_v54 = vpop.permute.xlu1 %400 }
  0x99   : > { %v398_v55 = vpop.permute.xlu0 %397  ;;  %vm425_vm8 = vcmp.eq.s32.totalorder %v401_v54, %v1278_v37 }
  0x9a   : > { %vm424_vm9 = vcmp.eq.s32.totalorder %v398_v55, %v1278_v37  ;;  %1128 = vmatmul.mubr.msk.bf16.vlgmr.msra.gmra.mxu0 %vm461_vm5, %v447_v53  ;;  %v441_v56 = vsel %vm425_vm8, 1.0, %v1169_v42 }
  0x9b   : > { %v440_v57 = vsel %vm424_vm9, 1.0, %v1169_v42 }
  0x9c   : > { %v451_v58 = vpack.c.bf16 %v441_v56, %v440_v57  ;;  %v383_v59 = vpop.permute.xlu1 %382 }
  0x9d   : > { %v380_v60 = vpop.permute.xlu0 %379  ;;  %vm419_vm10 = vcmp.eq.s32.totalorder %v383_v59, %v1278_v37 }
  0x9e   : > { %vm418_vm11 = vcmp.eq.s32.totalorder %v380_v60, %v1278_v37  ;;  %1136 = vmatmul.mubr.msk.bf16.vlgmr.msra.gmra.mxu1 %vm461_vm5, %v451_v58  ;;  %v435_v61 = vsel %vm419_vm10, 1.0, %v1169_v42 }
  0x9f   : > { %v434_v62 = vsel %vm418_vm11, 1.0, %v1169_v42 }
  0xa0   : > { %v448_v63 = vpack.c.bf16 %v435_v61, %v434_v62  ;;  %v407_v0 = vpop.permute.xlu1 %406 }
  0xa1   : > { %v404_v1 = vpop.permute.xlu0 %403  ;;  %vm427_vm12 = vcmp.eq.s32.totalorder %v407_v0, %v1278_v37 }
  0xa2   : > { %vm426_vm13 = vcmp.eq.s32.totalorder %v404_v1, %v1278_v37  ;;  %1131 = vmatprep.mubr.msk.bf16.mxu0 %vm461_vm5, %v448_v63  ;;  %v443_v2 = vsel %vm427_vm12, 1.0, %v1169_v42 }
  0xa3   : > { %v442_v3 = vsel %vm426_vm13, 1.0, %v1169_v42 }
  0xa4   : > { %v452_v4 = vpack.c.bf16 %v443_v2, %v442_v3  ;;  %v389_v5 = vpop.permute.xlu1 %388 }
  0xa5   : > { %v386_v6 = vpop.permute.xlu0 %385  ;;  %vm421_vm14 = vcmp.eq.s32.totalorder %v389_v5, %v1278_v37 }
  0xa6   : > { %vm420_vm15 = vcmp.eq.s32.totalorder %v386_v6, %v1278_v37  ;;  %1139 = vmatprep.mubr.msk.bf16.mxu1 %vm461_vm5, %v452_v4  ;;  %v437_v7 = vsel %vm421_vm14, 1.0, %v1169_v42 }
  0xa7   : > { %v436_v8 = vsel %vm420_vm15, 1.0, %v1169_v42 }
  0xa8   : > { %v449_v9 = vpack.c.bf16 %v437_v7, %v436_v8  ;;  %v413_v10 = vpop.permute.xlu1 %412 }
  0xa9   : > { %v410_v11 = vpop.permute.xlu0 %409  ;;  %vm429_vm0 = vcmp.eq.s32.totalorder %v413_v10, %v1278_v37 }
  0xaa   : > { %vm428_vm1 = vcmp.eq.s32.totalorder %v410_v11, %v1278_v37  ;;  %1132 = vmatmul.mubr.msk.bf16.gmra.mxu0 %vm461_vm5, %v449_v9  ;;  %v445_v12 = vsel %vm429_vm0, 1.0, %v1169_v42 }
  0xab   : > { %v444_v13 = vsel %vm428_vm1, 1.0, %v1169_v42 }
  0xac   : > { %v453_v15 = vpack.c.bf16 %v445_v12, %v444_v13  ;;  %v693_v17 = vpop.permute.xlu1 %692 }
  0xad   : > { %v688_v18 = vpop.permute.xlu0 %687  ;;  %v772_v19 = vmul.f32 %v1306_v14, %v693_v17 }
  0xae   : > { %v771_v20 = vmul.f32 %v1306_v14, %v688_v18  ;;  %1140 = vmatmul.mubr.msk.bf16.gmra.mxu1 %vm461_vm5, %v453_v15 }
  0xaf   : > { %v795_v21 = vadd.f32 %v1311_v16, %v772_v19 }
  0xb0   : > { %v794_v22 = vadd.f32 %v1311_v16, %v771_v20  ;;  %v703_v23 = vpop.permute.xlu1 %702 }
  0xb1   : > { %v698_v24 = vpop.permute.xlu0 %697  ;;  %v811_v26 = vmax.f32 %v795_v21, 0.0  ;;  %v774_v28 = vmul.f32 %v1306_v14, %v703_v23 }
  0xb2   : > { %v810_v27 = vmax.f32 %v794_v22, 0.0  ;;  %v773_v29 = vmul.f32 %v1306_v14, %v698_v24 }
  0xb3   : > { %v797_v30 = vadd.f32 %v1311_v16, %v774_v28  ;;  %v834_v32 = vmul.f32 %v1321_v25, %v811_v26 }
  0xb4   : > { %v796_v31 = vadd.f32 %v1311_v16, %v773_v29  ;;  %v833_v33 = vmul.f32 %v1321_v25, %v810_v27  ;;  %v713_v34 = vpop.permute.xlu1 %712 }
  0xb5   : > { %v708_v35 = vpop.permute.xlu0 %707  ;;  %v776_v37 = vmul.f32 %v1306_v14, %v713_v34  ;;  %v813_v39 = vmax.f32 %v797_v30, 0.0  ;;  %v853_v40 = vsel %vm849_vm2, %v834_v32, 0.0 }
  0xb6   : > { %v812_v36 = vmax.f32 %v796_v31, 0.0  ;;  %v775_v38 = vmul.f32 %v1306_v14, %v708_v35  ;;  %v850_v41 = vsel %vm849_vm2, %v833_v33, 0.0  ;;  %854 = vadd.xlane.f32.xlu1 %v853_v40 }
  0xb7   : > { %v799_v42 = vadd.f32 %v1311_v16, %v776_v37  ;;  %851 = vadd.xlane.f32.xlu0 %v850_v41  ;;  %v836_v52 = vmul.f32 %v1321_v25, %v813_v39 }
  0xb8   : > { %v798_v43 = vadd.f32 %v1311_v16, %v775_v38  ;;  %v835_v44 = vmul.f32 %v1321_v25, %v812_v36  ;;  %v723_v45 = vpop.permute.xlu1 %722 }
  0xb9   : > { %v718_v46 = vpop.permute.xlu0 %717  ;;  %v778_v48 = vmul.f32 %v1306_v14, %v723_v45  ;;  %v815_v50 = vmax.f32 %v799_v42, 0.0  ;;  %v859_v62 = vsel %vm849_vm2, %v836_v52, 0.0 }
  0xba   : > { %v814_v47 = vmax.f32 %v798_v43, 0.0  ;;  %v777_v49 = vmul.f32 %v1306_v14, %v718_v46  ;;  %v856_v51 = vsel %vm849_vm2, %v835_v44, 0.0 }
  0xbb   : > { %v801_v53 = vadd.f32 %v1311_v16, %v778_v48  ;;  %857 = vadd.xlane.f32.xlu0 %v856_v51  ;;  %v838_v0 = vmul.f32 %v1321_v25, %v815_v50  ;;  %v1383_v51 = vld [vmem:[#allocation2] ss:$0 sm:$0xff] }
  0xbc   : > { %v800_v54 = vadd.f32 %v1311_v16, %v777_v49  ;;  %v837_v55 = vmul.f32 %v1321_v25, %v814_v47  ;;  %v733_v56 = vpop.permute.xlu1 %732 }
  0xbd   : > { %v728_v57 = vpop.permute.xlu0 %727  ;;  %v780_v59 = vmul.f32 %v1306_v14, %v733_v56  ;;  %v817_v61 = vmax.f32 %v801_v53, 0.0  ;;  %v865_v10 = vsel %vm849_vm2, %v838_v0, 0.0 }
  0xbe   : > { %v816_v58 = vmax.f32 %v800_v54, 0.0  ;;  %v779_v60 = vmul.f32 %v1306_v14, %v728_v57  ;;  %v862_v63 = vsel %vm849_vm2, %v837_v55, 0.0 }
  0xbf   : > { %v803_v1 = vadd.f32 %v1311_v16, %v780_v59  ;;  %860 = vadd.xlane.f32.xlu0 %v859_v62  ;;  %863 = vadd.xlane.f32.xlu1 %v862_v63  ;;  %v840_v12 = vmul.f32 %v1321_v25, %v817_v61 }
  0xc0   : > { %v802_v2 = vadd.f32 %v1311_v16, %v779_v60  ;;  %v839_v3 = vmul.f32 %v1321_v25, %v816_v58  ;;  %v743_v4 = vpop.permute.xlu1 %742 }
  0xc1   : > { %v738_v5 = vpop.permute.xlu0 %737  ;;  %v782_v7 = vmul.f32 %v1306_v14, %v743_v4  ;;  %v819_v9 = vmax.f32 %v803_v1, 0.0  ;;  %v871_v24 = vsel %vm849_vm2, %v840_v12, 0.0 }
  0xc2   : > { %v818_v6 = vmax.f32 %v802_v2, 0.0  ;;  %v781_v8 = vmul.f32 %v1306_v14, %v738_v5  ;;  %v868_v11 = vsel %vm849_vm2, %v839_v3, 0.0 }
  0xc3   : > { %v805_v13 = vadd.f32 %v1311_v16, %v782_v7  ;;  %866 = vadd.xlane.f32.xlu0 %v865_v10  ;;  %869 = vadd.xlane.f32.xlu1 %v868_v11  ;;  %v842_v27 = vmul.f32 %v1321_v25, %v819_v9 }
  0xc4   : > { %v804_v15 = vadd.f32 %v1311_v16, %v781_v8  ;;  %v841_v17 = vmul.f32 %v1321_v25, %v818_v6  ;;  %v753_v18 = vpop.permute.xlu1 %752 }
  0xc5   : > { %v748_v19 = vpop.permute.xlu0 %747  ;;  %v784_v21 = vmul.f32 %v1306_v14, %v753_v18  ;;  %v821_v23 = vmax.f32 %v805_v13, 0.0  ;;  %v877_v37 = vsel %vm849_vm2, %v842_v27, 0.0 }
  0xc6   : > { %v820_v20 = vmax.f32 %v804_v15, 0.0  ;;  %v783_v22 = vmul.f32 %v1306_v14, %v748_v19  ;;  %v874_v26 = vsel %vm849_vm2, %v841_v17, 0.0 }
  0xc7   : > { %v807_v28 = vadd.f32 %v1311_v16, %v784_v21  ;;  %872 = vadd.xlane.f32.xlu0 %v871_v24  ;;  %875 = vadd.xlane.f32.xlu1 %v874_v26  ;;  %v844_v39 = vmul.f32 %v1321_v25, %v821_v23 }
  0xc8   : > { %v806_v29 = vadd.f32 %v1311_v16, %v783_v22  ;;  %v843_v30 = vmul.f32 %v1321_v25, %v820_v20  ;;  %v763_v31 = vpop.permute.xlu1 %762 }
  0xc9   : > { %v758_v32 = vpop.permute.xlu0 %757  ;;  %v786_v34 = vmul.f32 %v1306_v14, %v763_v31  ;;  %v823_v36 = vmax.f32 %v807_v28, 0.0 }
  0xca   : > { %v822_v33 = vmax.f32 %v806_v29, 0.0  ;;  %v785_v35 = vmul.f32 %v1306_v14, %v758_v32  ;;  %v880_v38 = vsel %vm849_vm2, %v843_v30, 0.0  ;;  %v883_v14 = vsel %vm849_vm2, %v844_v39, 0.0 }
  0xcb   : > { %v809_v40 = vadd.f32 %v1311_v16, %v786_v34  ;;  %878 = vadd.xlane.f32.xlu0 %v877_v37  ;;  %881 = vadd.xlane.f32.xlu1 %v880_v38  ;;  %v846_v46 = vmul.f32 %v1321_v25, %v823_v36 }
  0xcc   : > { %v808_v41 = vadd.f32 %v1311_v16, %v785_v35  ;;  %v845_v42 = vmul.f32 %v1321_v25, %v822_v33 }
  0xcd   : > { %v825_v45 = vmax.f32 %v809_v40, 0.0  ;;  %v889_v16 = vsel %vm849_vm2, %v846_v46, 0.0 }
  0xce   : > { %v824_v43 = vmax.f32 %v808_v41, 0.0  ;;  %v886_v44 = vsel %vm849_vm2, %v845_v42, 0.0 }
  0xcf   : > { %884 = vadd.xlane.f32.xlu0 %v883_v14  ;;  %887 = vadd.xlane.f32.xlu1 %v886_v44  ;;  %v848_v49 = vmul.f32 %v1321_v25, %v825_v45 }
  0xd0   : > { %v847_v47 = vmul.f32 %v1321_v25, %v824_v43 }
  0xd1   : > { %v895_v50 = vsel %vm849_vm2, %v848_v49, 0.0 }
  0xd2   : > { %v892_v48 = vsel %vm849_vm2, %v847_v47, 0.0 }
  0xd3   : > { %890 = vadd.xlane.f32.xlu0 %v889_v16  ;;  %893 = vadd.xlane.f32.xlu1 %v892_v48 }
  0xd7   : > { %896 = vadd.xlane.f32.xlu0 %v895_v50 }
 0x13f   : > { %v855_v52 = vpop.xlane.xlu1 %854 }
 0x140   : > { %v852_v53 = vpop.xlane.xlu0 %851  ;;  %v906_v54 = vadd.f32 %v1383_v51, %v855_v52 }
 0x141   : > { %v905_v55 = vadd.f32 %v1383_v51, %v852_v53 }
 0x142   : > { %v922_v25 = vmax.f32 %v906_v54, 0.0 }
 0x143   : > { %v921_v56 = vmax.f32 %v905_v55, 0.0 }
 0x144   : > { %v858_v57 = vpop.xlane.xlu0 %857  ;;  %939 = vst.msk [vmem:[%s1391_s26 + $0x8] sm:$0xff] %vm937_vm3, %v922_v25 }
 0x145   : > { %938 = vst.msk [vmem:[%s1391_s26] sm:$0xff] %vm937_vm3, %v921_v56  ;;  %v907_v58 = vadd.f32 %v1383_v51, %v858_v57 }
 0x147   : > { %v923_v59 = vmax.f32 %v907_v58, 0.0 }
 0x148   : > { %v864_v60 = vpop.xlane.xlu1 %863  ;;  %v861_v61 = vpop.xlane.xlu0 %860 }
 0x149   : > { %940 = vst.msk [vmem:[%s1391_s26 + $0x10] sm:$0xff] %vm937_vm3, %v923_v59  ;;  %v909_v62 = vadd.f32 %v1383_v51, %v864_v60  ;;  %v908_v63 = vadd.f32 %v1383_v51, %v861_v61 }
 0x14b   : > { %v925_v0 = vmax.f32 %v909_v62, 0.0  ;;  %v924_v1 = vmax.f32 %v908_v63, 0.0 }
 0x14c   : > { %v870_v2 = vpop.xlane.xlu1 %869  ;;  %v867_v3 = vpop.xlane.xlu0 %866 }
 0x14d   : > { %942 = vst.msk [vmem:[%s1391_s26 + $0x20] sm:$0xff] %vm937_vm3, %v925_v0  ;;  %941 = vst.msk [vmem:[%s1391_s26 + $0x18] sm:$0xff] %vm937_vm3, %v924_v1  ;;  %v911_v4 = vadd.f32 %v1383_v51, %v870_v2  ;;  %v910_v5 = vadd.f32 %v1383_v51, %v867_v3 }
 0x14f   : > { %v927_v6 = vmax.f32 %v911_v4, 0.0  ;;  %v926_v7 = vmax.f32 %v910_v5, 0.0 }
 0x150   : > { %v876_v8 = vpop.xlane.xlu1 %875  ;;  %v873_v9 = vpop.xlane.xlu0 %872 }
 0x151   : > { %944 = vst.msk [vmem:[%s1391_s26 + $0x30] sm:$0xff] %vm937_vm3, %v927_v6  ;;  %943 = vst.msk [vmem:[%s1391_s26 + $0x28] sm:$0xff] %vm937_vm3, %v926_v7  ;;  %v913_v10 = vadd.f32 %v1383_v51, %v876_v8  ;;  %v912_v11 = vadd.f32 %v1383_v51, %v873_v9 }
 0x153   : > { %v929_v12 = vmax.f32 %v913_v10, 0.0  ;;  %v928_v13 = vmax.f32 %v912_v11, 0.0 }
 0x154   : > { %v882_v15 = vpop.xlane.xlu1 %881  ;;  %v879_v17 = vpop.xlane.xlu0 %878 }
 0x155   : > { %946 = vst.msk [vmem:[%s1391_s26 + $0x40] sm:$0xff] %vm937_vm3, %v929_v12  ;;  %945 = vst.msk [vmem:[%s1391_s26 + $0x38] sm:$0xff] %vm937_vm3, %v928_v13  ;;  %v915_v18 = vadd.f32 %v1383_v51, %v882_v15  ;;  %v914_v19 = vadd.f32 %v1383_v51, %v879_v17 }
 0x157   : > { %v931_v20 = vmax.f32 %v915_v18, 0.0  ;;  %v930_v21 = vmax.f32 %v914_v19, 0.0 }
 0x158   : > { %v888_v22 = vpop.xlane.xlu1 %887  ;;  %v885_v23 = vpop.xlane.xlu0 %884 }
 0x159   : > { %948 = vst.msk [vmem:[%s1391_s26 + $0x50] sm:$0xff] %vm937_vm3, %v931_v20  ;;  %947 = vst.msk [vmem:[%s1391_s26 + $0x48] sm:$0xff] %vm937_vm3, %v930_v21  ;;  %v917_v24 = vadd.f32 %v1383_v51, %v888_v22  ;;  %v916_v26 = vadd.f32 %v1383_v51, %v885_v23 }
 0x15a   : > { %v1129_v27 = vpop.f32.mrf.mxu0 }
 0x15b   : > { %v1102_v28 = vpack.c.bf16 %v1129_v27, %v1129_v27  ;;  %v933_v29 = vmax.f32 %v917_v24, 0.0  ;;  %v932_v30 = vmax.f32 %v916_v26, 0.0 }
 0x15c   : > { %v524_v31 = vpop.f32.mrf.mxu0  ;;  %v894_v33 = vpop.xlane.xlu1 %893 }
 0x15d   : > { %654 = vst.msk [vmem:[%s1430_s6 + $0x8] sm:$0xf] %vm651_vm4, %v1102_v28  ;;  %v1100_v32 = vpack.c.bf16 %v524_v31, %v524_v31  ;;  %v891_v34 = vpop.xlane.xlu0 %890  ;;  %v919_v35 = vadd.f32 %v1383_v51, %v894_v33 }
 0x15e   : > { %950 = vst.msk [vmem:[%s1391_s26 + $0x60] sm:$0xff] %vm937_vm3, %v933_v29  ;;  %949 = vst.msk [vmem:[%s1391_s26 + $0x58] sm:$0xff] %vm937_vm3, %v932_v30  ;;  %v918_v36 = vadd.f32 %v1383_v51, %v891_v34  ;;  %v1130_v37 = vpop.f32.mrf.mxu0  ;;  %v1137_v38 = vpop.f32.mrf.mxu1 }
 0x15f   : > { %652 = vst.msk [vmem:[%s1430_s6] sm:$0xf] %vm651_vm4, %v1100_v32  ;;  %v1103_v39 = vpack.c.bf16 %v1130_v37, %v1130_v37  ;;  %v1110_v40 = vpack.c.bf16 %v1137_v38, %v1137_v38  ;;  %v935_v41 = vmax.f32 %v919_v35, 0.0 }
 0x160   : > { %v934_v42 = vmax.f32 %v918_v36, 0.0  ;;  %v527_v43 = vpop.f32.mrf.mxu0  ;;  %v556_v44 = vpop.f32.mrf.mxu1 }
 0x161   : > { %655 = vst.msk [vmem:[%s1430_s6 + $0xc] sm:$0xf] %vm651_vm4, %v1103_v39  ;;  %662 = vst.msk [vmem:[%s1430_s6 + $0x28] sm:$0xf] %vm651_vm4, %v1110_v40  ;;  %v1101_v45 = vpack.c.bf16 %v527_v43, %v527_v43  ;;  %v1108_v14 = vpack.c.bf16 %v556_v44, %v556_v44  ;;  %v897_v46 = vpop.xlane.xlu0 %896 }
 0x162   : > { %952 = vst.msk [vmem:[%s1391_s26 + $0x70] sm:$0xff] %vm937_vm3, %v935_v41  ;;  %951 = vst.msk [vmem:[%s1391_s26 + $0x68] sm:$0xff] %vm937_vm3, %v934_v42  ;;  %v920_v47 = vadd.f32 %v1383_v51, %v897_v46  ;;  %v1138_v48 = vpop.f32.mrf.mxu1 }
 0x163   : > { %653 = vst.msk [vmem:[%s1430_s6 + $0x4] sm:$0xf] %vm651_vm4, %v1101_v45  ;;  %660 = vst.msk [vmem:[%s1430_s6 + $0x20] sm:$0xf] %vm651_vm4, %v1108_v14  ;;  %v1111_v16 = vpack.c.bf16 %v1138_v48, %v1138_v48 }
 0x164   : > { %v936_v49 = vmax.f32 %v920_v47, 0.0  ;;  %v559_v50 = vpop.f32.mrf.mxu1 }
 0x165   : > { %663 = vst.msk [vmem:[%s1430_s6 + $0x2c] sm:$0xf] %vm651_vm4, %v1111_v16  ;;  %v1109_v52 = vpack.c.bf16 %v559_v50, %v559_v50 }
 0x166   : > { %953 = vst.msk [vmem:[%s1391_s26 + $0x78] sm:$0xff] %vm937_vm3, %v936_v49 }
 0x167   : > { %661 = vst.msk [vmem:[%s1430_s6 + $0x24] sm:$0xf] %vm651_vm4, %v1109_v52 }
 0x16a   : > { %v1133_v53 = vpop.f32.mrf.mxu0 }
 0x16b   : > { %v1106_v51 = vpack.c.bf16 %v1133_v53, %v1133_v53 }
 0x16c   : > { %v540_v54 = vpop.f32.mrf.mxu0 }
 0x16d   : > { %658 = vst.msk [vmem:[%s1430_s6 + $0x18] sm:$0xf] %vm651_vm4, %v1106_v51  ;;  %v1104_v55 = vpack.c.bf16 %v540_v54, %v540_v54 }
 0x16e   : > { %v1134_v25 = vpop.f32.mrf.mxu0  ;;  %v1141_v56 = vpop.f32.mrf.mxu1 }
 0x16f   : > { %656 = vst.msk [vmem:[%s1430_s6 + $0x10] sm:$0xf] %vm651_vm4, %v1104_v55  ;;  %v1107_v57 = vpack.c.bf16 %v1134_v25, %v1134_v25  ;;  %v1114_v58 = vpack.c.bf16 %v1141_v56, %v1141_v56 }
 0x170   : > { %v543_v59 = vpop.f32.mrf.mxu0  ;;  %v572_v60 = vpop.f32.mrf.mxu1 }
 0x171   : > { %659 = vst.msk [vmem:[%s1430_s6 + $0x1c] sm:$0xf] %vm651_vm4, %v1107_v57  ;;  %666 = vst.msk [vmem:[%s1430_s6 + $0x38] sm:$0xf] %vm651_vm4, %v1114_v58  ;;  %v1105_v61 = vpack.c.bf16 %v543_v59, %v543_v59  ;;  %v1112_v62 = vpack.c.bf16 %v572_v60, %v572_v60 }
 0x172   : > { %v1142_v63 = vpop.f32.mrf.mxu1 }
 0x173   : > { %657 = vst.msk [vmem:[%s1430_s6 + $0x14] sm:$0xf] %vm651_vm4, %v1105_v61  ;;  %664 = vst.msk [vmem:[%s1430_s6 + $0x30] sm:$0xf] %vm651_vm4, %v1112_v62  ;;  %v1115_v0 = vpack.c.bf16 %v1142_v63, %v1142_v63 }
 0x174   : > { %v575_v1 = vpop.f32.mrf.mxu1 }
 0x175   : > { %667 = vst.msk [vmem:[%s1430_s6 + $0x3c] sm:$0xf] %vm651_vm4, %v1115_v0  ;;  %v1113_v2 = vpack.c.bf16 %v575_v1, %v575_v1 }
 0x177   : > { %665 = vst.msk [vmem:[%s1430_s6 + $0x34] sm:$0xf] %vm651_vm4, %v1113_v2 }
 0x178 PF: > { %s21_s29 = sadd.s32 1, %s1166_s29  }
 0x179   : > { %p18_p4 = scmp.ge.s32.totalorder %s21_s29, 8  }
 0x17b   :  { %20 = sbr.rel (!%p18_p4) target bundleno = 3 (0x3), region = 93 }

</bundles_post_ra>
